<compile_context>
chip_gen: v7x
topology: tpu7x:2x2x1
jax: 0.10.0
libtpu: 0.0.40
codegen_flags: <defaults>
</compile_context>

<pallas_src>
import functools

import jax
import jax.numpy as jnp
from jax.experimental import pallas as pl
from jax.experimental.pallas import tpu as pltpu


# --------------------------------------------------------------------------
# Kernel
# --------------------------------------------------------------------------
def _vae_kernel(x_ref, eps_ref,
                we_ref, be_ref,
                wh_ref, bh_ref,
                wd1_ref, bd1_ref,
                wd2_ref, bd2_ref,
                recon_ref, ms_ref):
    zp = eps_ref.shape[-1]          # padded latent width (static)
    cd = we_ref.dtype               # matmul input dtype (bf16 by default)

    # --- encoder: relu(x @ W_e + b_e)  (MXU, f32 accumulate) ---
    h_enc = jnp.dot(x_ref[...], we_ref[...], preferred_element_type=jnp.float32)
    h_enc = jnp.maximum(h_enc + be_ref[...], 0.0)

    # --- fused latent heads: one wide matmul -> [mu | log_sigma] ---
    heads = jnp.dot(h_enc.astype(cd), wh_ref[...],
                    preferred_element_type=jnp.float32) + bh_ref[...]
    mu = heads[:, :zp]
    sigma = jnp.exp(heads[:, zp:])          # EUP, f32

    # --- reparameterization: z = mu + eps * sigma  (f32 elementwise) ---
    z = mu + eps_ref[...].astype(jnp.float32) * sigma

    # --- decoder: relu(z @ W_d1 + b_d1) @ W_d2 + b_d2 ---
    h_dec = jnp.dot(z.astype(cd), wd1_ref[...],
                    preferred_element_type=jnp.float32)
    h_dec = jnp.maximum(h_dec + bd1_ref[...], 0.0)
    recon = jnp.dot(h_dec.astype(cd), wd2_ref[...],
                    preferred_element_type=jnp.float32) + bd2_ref[...]

    # Lane-dense (128-aligned) stores.
    recon_ref[...] = recon.astype(recon_ref.dtype)
    ms_ref[:, :zp] = mu.astype(ms_ref.dtype)
    ms_ref[:, zp:] = sigma.astype(ms_ref.dtype)


# --------------------------------------------------------------------------
# Wrapper
# --------------------------------------------------------------------------
def _round_up(n, m):
    return ((n + m - 1) // m) * m


def _pad_to(a, shape):
    return jnp.pad(a, [(0, t - s) for s, t in zip(a.shape, shape)])


@functools.partial(jax.jit, static_argnames=("compute_dtype", "tile_b"))
def vae_forward(x, eps, params, compute_dtype=jnp.bfloat16, tile_b=None):
    """Fused VAE forward. x: (B, D_in), eps: (B, Z). Returns (recon, mu, sigma)."""
    B, D_in = x.shape
    Z = eps.shape[1]
    H = params["w_enc"].shape[1]

    D_pad = _round_up(D_in, 128)
    H_pad = _round_up(H, 128)
    Z_pad = _round_up(Z, 128)

    if tile_b is None:
        tile_b = min(256, _round_up(B, 8))
    B_pad = _round_up(B, tile_b)

    cd = jnp.dtype(compute_dtype)
    f32 = jnp.float32

    # Padded, lane-dense operands. Weights are stored (in, out), so the kernel
    # computes plain x @ W + b. Zero-padding keeps the math exact after slicing.
    x_p = _pad_to(x, (B_pad, D_pad)).astype(cd)
    eps_p = _pad_to(eps, (B_pad, Z_pad)).astype(cd)

    w_enc = _pad_to(params["w_enc"], (D_pad, H_pad)).astype(cd)
    b_enc = _pad_to(params["b_enc"], (1, H_pad)).astype(f32)
    # Fused latent heads: [W_mu | W_log_sigma] -> single (H_pad, 2*Z_pad) matmul.
    w_heads = jnp.concatenate(
        [_pad_to(params["w_mu"], (H_pad, Z_pad)),
         _pad_to(params["w_ls"], (H_pad, Z_pad))], axis=1).astype(cd)
    b_heads = jnp.concatenate(
        [_pad_to(params["b_mu"], (1, Z_pad)),
         _pad_to(params["b_ls"], (1, Z_pad))], axis=1).astype(f32)
    w_d1 = _pad_to(params["w_d1"], (Z_pad, H_pad)).astype(cd)
    b_d1 = _pad_to(params["b_d1"], (1, H_pad)).astype(f32)
    w_d2 = _pad_to(params["w_d2"], (H_pad, D_pad)).astype(cd)
    b_d2 = _pad_to(params["b_d2"], (1, D_pad)).astype(f32)

    inputs = (x_p, eps_p, w_enc, b_enc, w_heads, b_heads, w_d1, b_d1, w_d2, b_d2)

    grid = (B_pad // tile_b,)

    def tiled(shape):
        # Batch-streamed block: new rows every grid step.
        return pl.BlockSpec((tile_b, shape[1]), lambda i: (i, 0))

    def resident(shape):
        # Constant block index -> stays in VMEM, never re-fetched.
        return pl.BlockSpec(shape, lambda i: (0,) * len(shape))

    in_specs = [
        tiled(x_p.shape), tiled(eps_p.shape),
        resident(w_enc.shape), resident(b_enc.shape),
        resident(w_heads.shape), resident(b_heads.shape),
        resident(w_d1.shape), resident(b_d1.shape),
        resident(w_d2.shape), resident(b_d2.shape),
    ]
    out_specs = [
        pl.BlockSpec((tile_b, D_pad), lambda i: (i, 0)),
        pl.BlockSpec((tile_b, 2 * Z_pad), lambda i: (i, 0)),
    ]
    out_shape = [
        jax.ShapeDtypeStruct((B_pad, D_pad), f32),
        jax.ShapeDtypeStruct((B_pad, 2 * Z_pad), f32),
    ]

    # Advisory cost estimate for XLA's scheduler.
    flops = 2 * B_pad * (D_pad * H_pad + H_pad * 2 * Z_pad
                         + Z_pad * H_pad + H_pad * D_pad)
    bytes_in = sum(a.size * a.dtype.itemsize for a in inputs)
    bytes_out = B_pad * (D_pad + 2 * Z_pad) * 4
    cost = pl.CostEstimate(flops=flops, transcendentals=B_pad * Z_pad,
                           bytes_accessed=bytes_in + bytes_out)

    # VMEM budget: double-buffered activation tiles + resident weights + headroom,
    # kept well under v7x's 64 MiB physical VMEM.
    tile_bytes = (tile_b * (D_pad + Z_pad) * cd.itemsize          # x/eps tiles
                  + tile_b * (D_pad + 2 * Z_pad) * 4)             # recon/[mu|sigma] tiles
    weight_bytes = sum(a.size * a.dtype.itemsize for a in inputs[2:])
    vmem_limit = int(min(48 * 2**20,
                         max(16 * 2**20,
                             4 * tile_bytes + 2 * weight_bytes + (4 << 20))))

    recon_p, ms_p = pl.pallas_call(
        _vae_kernel,
        grid=grid,
        in_specs=in_specs,
        out_specs=out_specs,
        out_shape=out_shape,
        compiler_params=pltpu.CompilerParams(
            dimension_semantics=("parallel",),   # megacore sharding on v7x
            vmem_limit_bytes=vmem_limit),
        cost_estimate=cost,
    )(*inputs)

    recon = recon_p[:B, :D_in]
    mu = ms_p[:B, :Z]
    sigma = ms_p[:B, Z_pad:Z_pad + Z]
    return recon, mu, sigma


# --------------------------------------------------------------------------
# Init + reference (mirrors the kernel's cast chain exactly)
# --------------------------------------------------------------------------
def init_params(key, d_in, hidden, latent):
    """PyTorch nn.Linear-style init (uniform +-1/sqrt(fan_in)).
    Weights stored (in, out); biases (1, out)."""
    ks = jax.random.split(key, 10)

    def linear(kw, kb, fan_in, fan_out):
        bound = 1.0 / (fan_in ** 0.5)
        w = jax.random.uniform(kw, (fan_in, fan_out), jnp.float32, -bound, bound)
        b = jax.random.uniform(kb, (1, fan_out), jnp.float32, -bound, bound)
        return w, b

    w_enc, b_enc = linear(ks[0], ks[1], d_in, hidden)
    w_mu, b_mu = linear(ks[2], ks[3], hidden, latent)
    w_ls, b_ls = linear(ks[4], ks[5], hidden, latent)
    w_d1, b_d1 = linear(ks[6], ks[7], latent, hidden)
    w_d2, b_d2 = linear(ks[8], ks[9], hidden, d_in)
    return dict(w_enc=w_enc, b_enc=b_enc, w_mu=w_mu, b_mu=b_mu,
                w_ls=w_ls, b_ls=b_ls, w_d1=w_d1, b_d1=b_d1,
                w_d2=w_d2, b_d2=b_d2)


def vae_reference(x, eps, p, compute_dtype=jnp.bfloat16):
    """Pure-JAX reference using the same bf16-matmul / f32-accumulate recipe."""
    cd = jnp.dtype(compute_dtype)
    f32 = jnp.float32
    xc = x.astype(cd)
    eps_f = eps.astype(cd).astype(f32)
    h = jnp.maximum(jnp.dot(xc, p["w_enc"].astype(cd),
                            preferred_element_type=f32) + p["b_enc"], 0.0)
    mu = jnp.dot(h.astype(cd), p["w_mu"].astype(cd),
                 preferred_element_type=f32) + p["b_mu"]
    log_sigma = jnp.dot(h.astype(cd), p["w_ls"].astype(cd),
                        preferred_element_type=f32) + p["b_ls"]
    sigma = jnp.exp(log_sigma)
    z = mu + eps_f * sigma
    hd = jnp.maximum(jnp.dot(z.astype(cd), p["w_d1"].astype(cd),
                             preferred_element_type=f32) + p["b_d1"], 0.0)
    recon = jnp.dot(hd.astype(cd), p["w_d2"].astype(cd),
                    preferred_element_type=f32) + p["b_d2"]
    return recon, mu, sigma


# --------------------------------------------------------------------------
# Main
# --------------------------------------------------------------------------
if __name__ == "__main__":
    B, D_IN, HIDDEN, LATENT = 2, 16, 32, 8

    key = jax.random.PRNGKey(0)
    k_x, k_eps, k_p = jax.random.split(key, 3)

    x = jax.random.normal(k_x, (B, D_IN), jnp.float32)
    # eps plays the role of torch.randn_like(sigma), drawn deterministically.
    eps = jax.random.normal(k_eps, (B, LATENT), jnp.float32)
    params = init_params(k_p, D_IN, HIDDEN, LATENT)

    recon, mu, sigma = vae_forward(x, eps, params)
    recon, mu, sigma = jax.block_until_ready((recon, mu, sigma))

    # Sanity check against a pure-JAX reference of the same (bf16-matmul) math.
    r_ref, mu_ref, s_ref = vae_reference(x, eps, params)
    assert jnp.allclose(recon, r_ref, atol=1e-3, rtol=1e-3), "recon mismatch"
    assert jnp.allclose(mu, mu_ref, atol=1e-3, rtol=1e-3), "mu mismatch"
    assert jnp.allclose(sigma, s_ref, atol=1e-3, rtol=1e-3), "sigma mismatch"

    print("KERNEL_OK")
</pallas_src>

<mosaic_0001>
module attributes {stable_mosaic.version = 11 : i64} {
  func.func @_vae_kernel(%arg0: i32, %arg1: memref<8x128xbf16, #tpu.memory_space<vmem>>, %arg2: memref<8x128xbf16, #tpu.memory_space<vmem>>, %arg3: memref<128x128xbf16, #tpu.memory_space<vmem>>, %arg4: memref<1x128xf32, #tpu.memory_space<vmem>>, %arg5: memref<128x256xbf16, #tpu.memory_space<vmem>>, %arg6: memref<1x256xf32, #tpu.memory_space<vmem>>, %arg7: memref<128x128xbf16, #tpu.memory_space<vmem>>, %arg8: memref<1x128xf32, #tpu.memory_space<vmem>>, %arg9: memref<128x128xbf16, #tpu.memory_space<vmem>>, %arg10: memref<1x128xf32, #tpu.memory_space<vmem>>, %arg11: memref<8x128xf32, #tpu.memory_space<vmem>>, %arg12: memref<8x256xf32, #tpu.memory_space<vmem>>) attributes {dimension_semantics = [#tpu.dimension_semantics<parallel>], iteration_bounds = array<i64: 1>, scalar_prefetch = 0 : i64, scratch_operands = 0 : i64, tpu.core_type = #tpu.core_type<tc>, window_params = [{transform_indices = @transform_0, window_bounds = array<i64: 8, 128>}, {transform_indices = @transform_1, window_bounds = array<i64: 8, 128>}, {pipeline_mode = #tpu.pipeline_mode<synchronous>, transform_indices = @transform_2, window_bounds = array<i64: 128, 128>}, {pipeline_mode = #tpu.pipeline_mode<synchronous>, transform_indices = @transform_3, window_bounds = array<i64: 1, 128>}, {pipeline_mode = #tpu.pipeline_mode<synchronous>, transform_indices = @transform_4, window_bounds = array<i64: 128, 256>}, {pipeline_mode = #tpu.pipeline_mode<synchronous>, transform_indices = @transform_5, window_bounds = array<i64: 1, 256>}, {pipeline_mode = #tpu.pipeline_mode<synchronous>, transform_indices = @transform_6, window_bounds = array<i64: 128, 128>}, {pipeline_mode = #tpu.pipeline_mode<synchronous>, transform_indices = @transform_7, window_bounds = array<i64: 1, 128>}, {pipeline_mode = #tpu.pipeline_mode<synchronous>, transform_indices = @transform_8, window_bounds = array<i64: 128, 128>}, {pipeline_mode = #tpu.pipeline_mode<synchronous>, transform_indices = @transform_9, window_bounds = array<i64: 1, 128>}, {transform_indices = @transform_10, window_bounds = array<i64: 8, 128>}, {transform_indices = @transform_11, window_bounds = array<i64: 8, 256>}]} {
    %c0 = arith.constant 0 : index
    %c0_0 = arith.constant 0 : index
    %0 = vector.load %arg1[%c0, %c0_0] : memref<8x128xbf16, #tpu.memory_space<vmem>>, vector<8x128xbf16>
    %c0_1 = arith.constant 0 : index
    %c0_2 = arith.constant 0 : index
    %1 = vector.load %arg3[%c0_1, %c0_2] : memref<128x128xbf16, #tpu.memory_space<vmem>>, vector<128x128xbf16>
    %cst = arith.constant dense<0.000000e+00> : vector<8x128xf32>
    %2 = tpu.matmul %0, %1, %cst {dimension_numbers = #tpu.dot_dimension_numbers<[1], [0], [0], [1], [0, 0, 1, 1], [], []>} : vector<8x128xbf16>, vector<128x128xbf16>, vector<8x128xf32> -> vector<8x128xf32>
    %c0_3 = arith.constant 0 : index
    %c0_4 = arith.constant 0 : index
    %3 = vector.load %arg4[%c0_3, %c0_4] : memref<1x128xf32, #tpu.memory_space<vmem>>, vector<1x128xf32>
    %4 = vector.broadcast %3 : vector<1x128xf32> to vector<8x128xf32>
    %5 = arith.addf %2, %4 : vector<8x128xf32>
    %cst_5 = arith.constant 0.000000e+00 : f32
    %6 = vector.broadcast %cst_5 : f32 to vector<8x128xf32>
    %7 = arith.maximumf %5, %6 : vector<8x128xf32>
    %8 = arith.truncf %7 : vector<8x128xf32> to vector<8x128xbf16>
    %c0_6 = arith.constant 0 : index
    %c0_7 = arith.constant 0 : index
    %9 = vector.load %arg5[%c0_6, %c0_7] : memref<128x256xbf16, #tpu.memory_space<vmem>>, vector<128x256xbf16>
    %cst_8 = arith.constant dense<0.000000e+00> : vector<8x256xf32>
    %10 = tpu.matmul %8, %9, %cst_8 {dimension_numbers = #tpu.dot_dimension_numbers<[1], [0], [0], [1], [0, 0, 1, 1], [], []>} : vector<8x128xbf16>, vector<128x256xbf16>, vector<8x256xf32> -> vector<8x256xf32>
    %c0_9 = arith.constant 0 : index
    %c0_10 = arith.constant 0 : index
    %11 = vector.load %arg6[%c0_9, %c0_10] : memref<1x256xf32, #tpu.memory_space<vmem>>, vector<1x256xf32>
    %12 = vector.broadcast %11 : vector<1x256xf32> to vector<8x256xf32>
    %13 = arith.addf %10, %12 : vector<8x256xf32>
    %14 = vector.extract_strided_slice %13 {offsets = [0, 0], sizes = [8, 128], strides = [1, 1]} : vector<8x256xf32> to vector<8x128xf32>
    %15 = vector.extract_strided_slice %13 {offsets = [0, 128], sizes = [8, 128], strides = [1, 1]} : vector<8x256xf32> to vector<8x128xf32>
    %16 = math.exp %15 : vector<8x128xf32>
    %c0_11 = arith.constant 0 : index
    %c0_12 = arith.constant 0 : index
    %17 = vector.load %arg2[%c0_11, %c0_12] : memref<8x128xbf16, #tpu.memory_space<vmem>>, vector<8x128xbf16>
    %18 = arith.extf %17 : vector<8x128xbf16> to vector<8x128xf32>
    %19 = arith.mulf %18, %16 : vector<8x128xf32>
    %20 = arith.addf %14, %19 : vector<8x128xf32>
    %21 = arith.truncf %20 : vector<8x128xf32> to vector<8x128xbf16>
    %c0_13 = arith.constant 0 : index
    %c0_14 = arith.constant 0 : index
    %22 = vector.load %arg7[%c0_13, %c0_14] : memref<128x128xbf16, #tpu.memory_space<vmem>>, vector<128x128xbf16>
    %cst_15 = arith.constant dense<0.000000e+00> : vector<8x128xf32>
    %23 = tpu.matmul %21, %22, %cst_15 {dimension_numbers = #tpu.dot_dimension_numbers<[1], [0], [0], [1], [0, 0, 1, 1], [], []>} : vector<8x128xbf16>, vector<128x128xbf16>, vector<8x128xf32> -> vector<8x128xf32>
    %c0_16 = arith.constant 0 : index
    %c0_17 = arith.constant 0 : index
    %24 = vector.load %arg8[%c0_16, %c0_17] : memref<1x128xf32, #tpu.memory_space<vmem>>, vector<1x128xf32>
    %25 = vector.broadcast %24 : vector<1x128xf32> to vector<8x128xf32>
    %26 = arith.addf %23, %25 : vector<8x128xf32>
    %cst_18 = arith.constant 0.000000e+00 : f32
    %27 = vector.broadcast %cst_18 : f32 to vector<8x128xf32>
    %28 = arith.maximumf %26, %27 : vector<8x128xf32>
    %29 = arith.truncf %28 : vector<8x128xf32> to vector<8x128xbf16>
    %c0_19 = arith.constant 0 : index
    %c0_20 = arith.constant 0 : index
    %30 = vector.load %arg9[%c0_19, %c0_20] : memref<128x128xbf16, #tpu.memory_space<vmem>>, vector<128x128xbf16>
    %cst_21 = arith.constant dense<0.000000e+00> : vector<8x128xf32>
    %31 = tpu.matmul %29, %30, %cst_21 {dimension_numbers = #tpu.dot_dimension_numbers<[1], [0], [0], [1], [0, 0, 1, 1], [], []>} : vector<8x128xbf16>, vector<128x128xbf16>, vector<8x128xf32> -> vector<8x128xf32>
    %c0_22 = arith.constant 0 : index
    %c0_23 = arith.constant 0 : index
    %32 = vector.load %arg10[%c0_22, %c0_23] : memref<1x128xf32, #tpu.memory_space<vmem>>, vector<1x128xf32>
    %33 = vector.broadcast %32 : vector<1x128xf32> to vector<8x128xf32>
    %34 = arith.addf %31, %33 : vector<8x128xf32>
    %c0_24 = arith.constant 0 : index
    %c0_25 = arith.constant 0 : index
    %35 = vector.load %arg11[%c0_24, %c0_25] : memref<8x128xf32, #tpu.memory_space<vmem>>, vector<8x128xf32>
    tpu.vector_store %arg11[%c0_24, %c0_25], %34 {strides = array<i32>} : memref<8x128xf32, #tpu.memory_space<vmem>>, vector<8x128xf32>,
    %c0_26 = arith.constant 0 : index
    %c0_27 = arith.constant 0 : index
    %36 = vector.load %arg12[%c0_26, %c0_27] : memref<8x256xf32, #tpu.memory_space<vmem>>, vector<8x128xf32>
    tpu.vector_store %arg12[%c0_26, %c0_27], %14 {strides = array<i32>} : memref<8x256xf32, #tpu.memory_space<vmem>>, vector<8x128xf32>,
    %c0_28 = arith.constant 0 : index
    %c128 = arith.constant 128 : index
    %37 = vector.load %arg12[%c0_28, %c128] : memref<8x256xf32, #tpu.memory_space<vmem>>, vector<8x128xf32>
    tpu.vector_store %arg12[%c0_28, %c128], %16 {strides = array<i32>} : memref<8x256xf32, #tpu.memory_space<vmem>>, vector<8x128xf32>,
    return
  }
  func.func @transform_0(%arg0: i32) -> (i32, i32) {
    %c0_i32 = arith.constant 0 : i32
    %c0_i32_0 = arith.constant 0 : i32
    return %arg0, %c0_i32 : i32, i32
  }
  func.func @transform_1(%arg0: i32) -> (i32, i32) {
    %c0_i32 = arith.constant 0 : i32
    %c0_i32_0 = arith.constant 0 : i32
    return %arg0, %c0_i32 : i32, i32
  }
  func.func @transform_2(%arg0: i32) -> (i32, i32) {
    %c0_i32 = arith.constant 0 : i32
    %c0_i32_0 = arith.constant 0 : i32
    %c0_i32_1 = arith.constant 0 : i32
    return %c0_i32, %c0_i32_0 : i32, i32
  }
  func.func @transform_3(%arg0: i32) -> (i32, i32) {
    %c0_i32 = arith.constant 0 : i32
    %c0_i32_0 = arith.constant 0 : i32
    %c0_i32_1 = arith.constant 0 : i32
    return %c0_i32, %c0_i32_0 : i32, i32
  }
  func.func @transform_4(%arg0: i32) -> (i32, i32) {
    %c0_i32 = arith.constant 0 : i32
    %c0_i32_0 = arith.constant 0 : i32
    %c0_i32_1 = arith.constant 0 : i32
    return %c0_i32, %c0_i32_0 : i32, i32
  }
  func.func @transform_5(%arg0: i32) -> (i32, i32) {
    %c0_i32 = arith.constant 0 : i32
    %c0_i32_0 = arith.constant 0 : i32
    %c0_i32_1 = arith.constant 0 : i32
    return %c0_i32, %c0_i32_0 : i32, i32
  }
  func.func @transform_6(%arg0: i32) -> (i32, i32) {
    %c0_i32 = arith.constant 0 : i32
    %c0_i32_0 = arith.constant 0 : i32
    %c0_i32_1 = arith.constant 0 : i32
    return %c0_i32, %c0_i32_0 : i32, i32
  }
  func.func @transform_7(%arg0: i32) -> (i32, i32) {
    %c0_i32 = arith.constant 0 : i32
    %c0_i32_0 = arith.constant 0 : i32
    %c0_i32_1 = arith.constant 0 : i32
    return %c0_i32, %c0_i32_0 : i32, i32
  }
  func.func @transform_8(%arg0: i32) -> (i32, i32) {
    %c0_i32 = arith.constant 0 : i32
    %c0_i32_0 = arith.constant 0 : i32
    %c0_i32_1 = arith.constant 0 : i32
    return %c0_i32, %c0_i32_0 : i32, i32
  }
  func.func @transform_9(%arg0: i32) -> (i32, i32) {
    %c0_i32 = arith.constant 0 : i32
    %c0_i32_0 = arith.constant 0 : i32
    %c0_i32_1 = arith.constant 0 : i32
    return %c0_i32, %c0_i32_0 : i32, i32
  }
  func.func @transform_10(%arg0: i32) -> (i32, i32) {
    %c0_i32 = arith.constant 0 : i32
    %c0_i32_0 = arith.constant 0 : i32
    return %arg0, %c0_i32 : i32, i32
  }
  func.func @transform_11(%arg0: i32) -> (i32, i32) {
    %c0_i32 = arith.constant 0 : i32
    %c0_i32_0 = arith.constant 0 : i32
    return %arg0, %c0_i32 : i32, i32
  }
}

</mosaic_0001>

<bundles_post_ra>
// kernel: vae_forward.1
= control target key start
LH: loop header
LB: loop body
LE: loop exit
PB: predicated region body
PF: predicated region fallthrough
CT: control target
= control target key end

     0   :  { %v726_v0 = vmov 0.0   ;;  %vm727_vm0 = vmmov 0   ;;  %v728_v26 = vmov 0   ;;  %v170_v49 = vlaneseq  ;;  %s966_s2 = inlined_call_operand.vmem [shape: bf16[128,128], index: 2, kind: input, shape index: {}]   ;;  %s967_s4 = inlined_call_operand.vmem [shape: bf16[128,256], index: 4, kind: input, shape index: {}]   ;;  %s968_s0 = inlined_call_operand.vmem [shape: bf16[8,128], index: 0, kind: input, shape index: {}]   ;;  %s969_s6 = inlined_call_operand.vmem [shape: bf16[128,128], index: 6, kind: input, shape index: {}]   ;;  %s970_s3 = inlined_call_operand.vmem [shape: f32[1,128], index: 3, kind: input, shape index: {}]   ;;  %s971_s8 = inlined_call_operand.vmem [shape: bf16[128,128], index: 8, kind: input, shape index: {}]   ;;  %s972_s5 = inlined_call_operand.vmem [shape: f32[1,256], index: 5, kind: input, shape index: {}]   ;;  %s973_s11 = inlined_call_operand.vmem [shape: f32[8,256], index: 11, kind: output, shape index: {1}]   ;;  %s974_s1 = inlined_call_operand.vmem [shape: bf16[8,128], index: 1, kind: input, shape index: {}]   ;;  %s975_s7 = inlined_call_operand.vmem [shape: f32[1,128], index: 7, kind: input, shape index: {}]   ;;  %s976_s9 = inlined_call_operand.vmem [shape: f32[1,128], index: 9, kind: input, shape index: {}]   ;;  %s977_s10 = inlined_call_operand.vmem [shape: f32[8,128], index: 10, kind: output, shape index: {0}]  }
   0x1   :  { %613 = vmatprep.subr.bf16.mxu0 %v726_v0  ;;  %v676_v1 = vld [vmem:[%s966_s2] sm:$0xff]   ;;  %629 = vmatprep.mubr.msk.bf16.mxu0 %vm727_vm0, %v726_v0  ;;  %v677_v2 = vld [vmem:[%s966_s2 + $0x8] sm:$0xff]   ;;  %v678_v3 = vld [vmem:[%s966_s2 + $0x10] sm:$0xff]  }
   0x2   :  { %614 = vmatpush3.bf16.msra.mxu0 %v676_v1  ;;  %v684_v4 = vld [vmem:[%s967_s4 + $0x4] ss:$8 sps:$4 sm:$0xff]   ;;  %v686_v5 = vld [vmem:[%s967_s4] ss:$8 sps:$4 sm:$0xff]   ;;  %v679_v6 = vld [vmem:[%s966_s2 + $0x18] sm:$0xff]   ;;  %292 = vmatprep.mubr.bf16.mxu1 %v728_v26  ;;  %v171_v50 = vshrl.u32 %v170_v49, 7 }
   0x3   :  { %615 = vmatprep.subr.bf16.mxu0 %v726_v0  ;;  %v687_v7 = vld [vmem:[%s967_s4 + $0x14] ss:$8 sps:$4 sm:$0xff]   ;;  %260 = vmatprep.subr.bf16.mxu1 %v684_v4  ;;  %v689_v8 = vld [vmem:[%s967_s4 + $0x10] ss:$8 sps:$4 sm:$0xff]   ;;  %v690_v9 = vld [vmem:[%s967_s4 + $0x24] ss:$8 sps:$4 sm:$0xff]  }
   0x4   :  { %261 = vmatpush1.bf16.msra.mxu1 %v686_v5  ;;  %v680_v10 = vld [vmem:[%s966_s2 + $0x20] sm:$0xff]   ;;  %v693_v12 = vld [vmem:[%s967_s4 + $0x34] ss:$8 sps:$4 sm:$0xff]   ;;  %v681_v13 = vld [vmem:[%s966_s2 + $0x28] sm:$0xff]   ;;  %v172_v51 = vsub.s32 0, %v171_v50  ;;  %v176_v53 = vsub.s32 1, %v171_v50 }
   0x5   :  { %262 = vmatprep.subr.bf16.mxu1 %v687_v7  ;;  %v692_v11 = vld [vmem:[%s967_s4 + $0x20] ss:$8 sps:$4 sm:$0xff]   ;;  %v695_v14 = vld [vmem:[%s967_s4 + $0x30] ss:$8 sps:$4 sm:$0xff]   ;;  %v696_v15 = vld [vmem:[%s967_s4 + $0x44] ss:$8 sps:$4 sm:$0xff]  }
   0x6   :  { %616 = vmatpush3.bf16.msra.mxu0 %v677_v2  ;;  %v682_v16 = vld [vmem:[%s966_s2 + $0x30] sm:$0xff]   ;;  %v698_v17 = vld [vmem:[%s967_s4 + $0x40] ss:$8 sps:$4 sm:$0xff]   ;;  %v683_v19 = vld [vmem:[%s966_s2 + $0x38] sm:$0xff]  }
   0x7   :  { %617 = vmatprep.subr.bf16.mxu0 %v726_v0  ;;  %v699_v18 = vld [vmem:[%s967_s4 + $0x54] ss:$8 sps:$4 sm:$0xff]   ;;  %v701_v20 = vld [vmem:[%s967_s4 + $0x50] ss:$8 sps:$4 sm:$0xff]   ;;  %v702_v21 = vld [vmem:[%s967_s4 + $0x64] ss:$8 sps:$4 sm:$0xff]  }
   0x8   :  { %263 = vmatpush1.bf16.msra.mxu1 %v689_v8  ;;  %v38_v22 = vld [vmem:[%s968_s0] sm:$0xf]  ;;  %v705_v24 = vld [vmem:[%s967_s4 + $0x74] ss:$8 sps:$4 sm:$0xff]   ;;  %v707_v25 = vld [vmem:[%s967_s4 + $0x70] ss:$8 sps:$4 sm:$0xff]  }
   0x9   :  { %264 = vmatprep.subr.bf16.mxu1 %v690_v9  ;;  %v704_v23 = vld [vmem:[%s967_s4 + $0x60] ss:$8 sps:$4 sm:$0xff]   ;;  %v710_v37 = vld [vmem:[%s969_s6 + $0x10] sm:$0xff]   ;;  %v711_v38 = vld [vmem:[%s969_s6 + $0x18] sm:$0xff]  }
   0xa   :  { %618 = vmatpush3.bf16.msra.mxu0 %v678_v3  ;;  %v708_v27 = vld [vmem:[%s969_s6] sm:$0xff]   ;;  %v709_v28 = vld [vmem:[%s969_s6 + $0x8] sm:$0xff]   ;;  %v714_v41 = vld [vmem:[%s969_s6 + $0x30] sm:$0xff]  }
   0xb   :  { %619 = vmatprep.subr.bf16.mxu0 %v726_v0  ;;  %v543_v29 = vld [vmem:[%s970_s3] ss:$0 sm:$0xff]  ;;  %v713_v40 = vld [vmem:[%s969_s6 + $0x28] sm:$0xff]   ;;  %v715_v42 = vld [vmem:[%s969_s6 + $0x38] sm:$0xff]  }
   0xc   :  { %265 = vmatpush1.bf16.msra.mxu1 %v692_v11  ;;  %v712_v39 = vld [vmem:[%s969_s6 + $0x20] sm:$0xff]   ;;  %v717_v44 = vld [vmem:[%s971_s8 + $0x8] sm:$0xff]   ;;  %v718_v45 = vld [vmem:[%s971_s8 + $0x10] sm:$0xff]  }
   0xd   :  { %266 = vmatprep.subr.bf16.mxu1 %v693_v12  ;;  %v716_v43 = vld [vmem:[%s971_s8] sm:$0xff]   ;;  %v719_v46 = vld [vmem:[%s971_s8 + $0x18] sm:$0xff]   ;;  %v721_v48 = vld [vmem:[%s971_s8 + $0x28] sm:$0xff]  }
   0xe   :  { %620 = vmatpush3.bf16.msra.mxu0 %v679_v6  ;;  %v720_v47 = vld [vmem:[%s971_s8 + $0x20] sm:$0xff]   ;;  %v722_v6 = vld [vmem:[%s971_s8 + $0x30] sm:$0xff]   ;;  %v723_v7 = vld [vmem:[%s971_s8 + $0x38] sm:$0xff]  }
   0xf   :  { %621 = vmatprep.subr.bf16.mxu0 %v726_v0  ;;  %v168_v52 = vld [vmem:[%s972_s5] sm:$0x3] }
  0x10   :  { %267 = vmatpush1.bf16.msra.mxu1 %v695_v14  ;;  %v173_v54 = vrot.slane %v168_v52, %v172_v51  ;;  %v177_v55 = vrot.slane %v168_v52, %v176_v53  ;;  %v303_v63 = vld [vmem:[%s974_s1] sm:$0xf] }
  0x11   :  { %268 = vmatprep.subr.bf16.mxu1 %v696_v15  ;;  %v304_v1 = vunpack.c.l.bf16 %v303_v63  ;;  %v568_v8 = vld [vmem:[%s975_s7] ss:$0 sm:$0xff] }
  0x12   :  { %622 = vmatpush3.bf16.msra.mxu0 %v680_v10 }
  0x13   :  { %623 = vmatprep.subr.bf16.mxu0 %v726_v0 }
  0x14   :  { %269 = vmatpush1.bf16.msra.mxu1 %v698_v17 }
  0x15   :  { %270 = vmatprep.subr.bf16.mxu1 %v699_v18 }
  0x16   :  { %624 = vmatpush3.bf16.msra.mxu0 %v681_v13 }
  0x17   :  { %625 = vmatprep.subr.bf16.mxu0 %v726_v0 }
  0x18   :  { %271 = vmatpush1.bf16.msra.mxu1 %v701_v20 }
  0x19   :  { %272 = vmatprep.subr.bf16.mxu1 %v702_v21 }
  0x1a   :  { %626 = vmatpush3.bf16.msra.mxu0 %v682_v16 }
  0x1b   :  { %627 = vmatprep.subr.bf16.mxu0 %v726_v0 }
  0x1c   :  { %273 = vmatpush1.bf16.msra.mxu1 %v704_v23 }
  0x1d   :  { %274 = vmatprep.subr.bf16.mxu1 %v705_v24 }
  0x1e   :  { %628 = vmatpush3.bf16.msra.mxu0 %v683_v19 }
  0x1f   :  { %633 = vmatprep.subr.bf16.mxu0 %v726_v0 }
  0x20   :  { %275 = vmatpush1.bf16.msra.mxu1 %v707_v25 }
  0x21   :  { %630 = vmatmul.mubr.bf16.vlgmr.msra.gmra.mrb[0].mxu0 %v38_v22  ;;  %653 = vmatprep.subr.bf16.mxu1 %v726_v0 }
  0x22   :  { %649 = vmatprep.mubr.msk.bf16.mxu0 %vm727_vm0, %v726_v0  ;;  %634 = vmatpush3.bf16.msra.mxu0 %v708_v27 }
  0x23   :  { %635 = vmatprep.subr.bf16.mxu0 %v726_v0 }
  0x26   :  { %636 = vmatpush3.bf16.msra.mxu0 %v709_v28 }
  0x27   :  { %637 = vmatprep.subr.bf16.mxu0 %v726_v0 }
  0x2a   :  { %638 = vmatpush3.bf16.msra.mxu0 %v710_v37 }
  0x2b   :  { %639 = vmatprep.subr.bf16.mxu0 %v726_v0 }
  0x2e   :  { %640 = vmatpush3.bf16.msra.mxu0 %v711_v38 }
  0x2f   :  { %641 = vmatprep.subr.bf16.mxu0 %v726_v0 }
  0x32   :  { %642 = vmatpush3.bf16.msra.mxu0 %v712_v39 }
  0x33   :  { %643 = vmatprep.subr.bf16.mxu0 %v726_v0 }
  0x36   :  { %644 = vmatpush3.bf16.msra.mxu0 %v713_v40 }
  0x37   :  { %645 = vmatprep.subr.bf16.mxu0 %v726_v0 }
  0x3a   :  { %646 = vmatpush3.bf16.msra.mxu0 %v714_v41 }
  0x3b   :  { %647 = vmatprep.subr.bf16.mxu0 %v726_v0 }
  0x3e   :  { %648 = vmatpush3.bf16.msra.mxu0 %v715_v42 }
  0xf4   :  { %v144_v30 = vpop.f32.mrb[0].mxu0 }
  0xf5   :  { %v145_v31 = vadd.f32 %v543_v29, %v144_v30  ;;  %v631_v32 = vpop.f32.mrb[1].mxu0 }
  0xf6   :  { %v147_v33 = vpop.f32.mrb[2].mxu0 }
  0xf7   :  { %v150_v34 = vmax.f32 %v145_v31, 0.0  ;;  %v632_v35 = vpop.f32.mrb[3].mxu0 }
  0xf9   :  { %v151_v36 = vpack.c.bf16 %v150_v34, %v150_v34 }
  0xfb   :  { %293 = vmatmul.mubr.bf16.vlgmr.msra.gmra.mrb[0].mxu1 %v151_v36 }
  0xfc   :  { %669 = vmatprep.mubr.msk.bf16.mxu1 %vm727_vm0, %v726_v0  ;;  %654 = vmatpush3.bf16.msra.mxu1 %v716_v43 }
  0xfd   :  { %655 = vmatprep.subr.bf16.mxu1 %v726_v0 }
 0x100   :  { %656 = vmatpush3.bf16.msra.mxu1 %v717_v44 }
 0x101   :  { %657 = vmatprep.subr.bf16.mxu1 %v726_v0 }
 0x104   :  { %658 = vmatpush3.bf16.msra.mxu1 %v718_v45 }
 0x105   :  { %659 = vmatprep.subr.bf16.mxu1 %v726_v0 }
 0x108   :  { %660 = vmatpush3.bf16.msra.mxu1 %v719_v46 }
 0x109   :  { %661 = vmatprep.subr.bf16.mxu1 %v726_v0 }
 0x10c   :  { %662 = vmatpush3.bf16.msra.mxu1 %v720_v47 }
 0x10d   :  { %663 = vmatprep.subr.bf16.mxu1 %v726_v0 }
 0x110   :  { %664 = vmatpush3.bf16.msra.mxu1 %v721_v48 }
 0x111   :  { %665 = vmatprep.subr.bf16.mxu1 %v726_v0 }
 0x114   :  { %666 = vmatpush3.bf16.msra.mxu1 %v722_v6 }
 0x115   :  { %667 = vmatprep.subr.bf16.mxu1 %v726_v0  ;;  %v577_v0 = vld [vmem:[%s976_s9] ss:$0 sm:$0xff] }
 0x118   :  { %668 = vmatpush3.bf16.msra.mxu1 %v723_v7 }
 0x1ce   :  { %v294_v56 = vpop.f32.mrb[0].mxu1 }
 0x1cf   :  { %v295_v57 = vadd.f32 %v294_v56, %v173_v54  ;;  %v296_v58 = vpop.f32.mrb[1].mxu1 }
 0x1d0   :  { %v297_v59 = vadd.f32 %v296_v58, %v177_v55  ;;  %v298_v60 = vpop.f32.mrb[2].mxu1 }
 0x1d1   :  { %533 = vst [vmem:[%s973_s11] sm:$0xff] %v295_v57  ;;  %v299_v61 = vpop.f32.mrb[3].mxu1 }
 0x1d2   :  { %v301_v62 = vmul.f32 1.442695, %v297_v59 }
 0x1d4   :  { %724 = vpow2.f32 %v301_v62 }
 0x1de   :  { %v725_v2 = vpop.eup %724 }
 0x1df   :  { %534 = vst [vmem:[%s973_s11 + $0x8] sm:$0xff] %v725_v2  ;;  %v305_v3 = vmul.f32 %v725_v2, %v304_v1 }
 0x1e1   :  { %v306_v4 = vadd.f32 %v305_v3, %v295_v57 }
 0x1e3   :  { %v307_v5 = vpack.c.bf16 %v306_v4, %v306_v4 }
 0x1e5   :  { %650 = vmatmul.mubr.bf16.vlgmr.msra.gmra.mrb[4].mxu0 %v307_v5 }
 0x2b8   :  { %v413_v9 = vpop.f32.mrb[4].mxu0 }
 0x2b9   :  { %v414_v10 = vadd.f32 %v568_v8, %v413_v9  ;;  %v651_v11 = vpop.f32.mrb[5].mxu0 }
 0x2ba   :  { %v416_v12 = vpop.f32.mrb[6].mxu0 }
 0x2bb   :  { %v419_v13 = vmax.f32 %v414_v10, 0.0  ;;  %v652_v14 = vpop.f32.mrb[7].mxu0 }
 0x2bd   :  { %v420_v15 = vpack.c.bf16 %v419_v13, %v419_v13 }
 0x2bf   :  { %670 = vmatmul.mubr.bf16.vlgmr.msra.gmra.mrb[4].mxu1 %v420_v15 }
 0x392   :  { %v526_v16 = vpop.f32.mrb[4].mxu1 }
 0x393   :  { %v527_v17 = vadd.f32 %v577_v0, %v526_v16  ;;  %v671_v18 = vpop.f32.mrb[5].mxu1 }
 0x394   :  { %v529_v19 = vpop.f32.mrb[6].mxu1 }
 0x395   :  { %532 = vst [vmem:[%s977_s10] sm:$0xff] %v527_v17  ;;  %v672_v20 = vpop.f32.mrb[7].mxu1 }

</bundles_post_ra>
